<compile_context>
chip_gen: v5e
topology: v5e:2x2
jax: 0.10.0
libtpu: 0.0.40
codegen_flags: <defaults>
</compile_context>

<pallas_src>
import functools

import jax
import jax.numpy as jnp
from jax.experimental import pallas as pl
from jax.experimental.pallas import tpu as pltpu


def _rep_memory_attn_kernel(*refs, scale, res):
    """rel = (rp @ tok^T) * scale; softmax over tokens; out = rel @ tok (+ tail)."""
    if res:
        rp_ref, tokT_ref, tok_ref, tail_ref, out_ref = refs
    else:
        rp_ref, tokT_ref, tok_ref, out_ref = refs
        tail_ref = None

    rp = rp_ref[...]            # (Bt*L, H)  native dtype (bf16 / f32)
    tok_t = tokT_ref[...]       # (H, LT)    pre-transposed tokeners
    tok = tok_ref[...]          # (LT, H)

    # rel[(b,l), t] = sum_h rp[(b,l), h] * tok[t, h]   (MXU, f32 accumulate)
    rel = jnp.dot(rp, tok_t, preferred_element_type=jnp.float32) * scale   # (Bt*L, LT)

    # softmax over the token (lane) axis, all in f32
    rel = rel - jnp.max(rel, axis=-1, keepdims=True)
    p = jnp.exp(rel)
    denom = jnp.sum(p, axis=-1, keepdims=True)
    inv = pl.reciprocal(denom, approx=True)        # EUP slot, ~free
    inv = inv * (2.0 - denom * inv)                # one NR step -> ~f32-exact
    p = p * inv

    # out[(b,l), h] = sum_t p[(b,l), t] * tok[t, h]
    tok_out = jnp.dot(p.astype(tok.dtype), tok,
                      preferred_element_type=jnp.float32)                  # (Bt*L, H)

    if res:
        tok_out = tok_out + tail_ref[...].astype(jnp.float32)
    out_ref[...] = tok_out.astype(out_ref.dtype)


def _pick_block_b(batch, block_b):
    """Largest divisor of `batch` that is <= block_b, keeping >= 2 grid steps
    when batch >= 2 (so v7x can shard the parallel axis across both TCs).
    Using a divisor avoids any zero-padded HBM copies of rp / tail."""
    cap = max(1, min(block_b, batch))
    if batch >= 2:
        cap = max(1, min(cap, batch // 2))
    best = 1
    for d in range(1, cap + 1):
        if batch % d == 0:
            best = d
    return best


def rep_memory_forward(embedding, tokeners, w1, b1, w2, b2, *,
                       reader_num, length, res,
                       block_b=128, vmem_limit_bytes=None):
    """embedding: (B,S,H); tokeners: (1, length*times, H);
    w1: (reader_num, 2*length); b1: (2*length,);
    w2: (2*length, length);     b2: (length,).
    (w1/w2 are stored transposed relative to torch.nn.Linear.weight.)"""
    B, S, H = embedding.shape
    LT = tokeners.shape[-2]
    L = length
    scale = float(H) ** -0.5
    dt = embedding.dtype

    if S < reader_num:
        raise ValueError("S must be >= reader_num")
    if res and S < length:
        raise ValueError("res=True requires S >= length")

    # --- tiny fc(readers^T) chain, hoisted out of the kernel (compute-negligible) ---
    readers = embedding[:, :reader_num, :].astype(jnp.float32)       # (B, R, H)
    x = jnp.swapaxes(readers, -1, -2)                                # (B, H, R)
    h = jax.nn.gelu(x @ w1 + b1, approximate=False)                  # (B, H, 2L)
    rp = h @ w2 + b2                                                 # (B, H, L)
    rp = jnp.swapaxes(rp, -1, -2).astype(dt)                         # (B, L, H)

    # --- flatten batch/length so every streamed block is a 2-D (rows, H) tile ---
    rp2d = rp.reshape(B * L, H)                                      # (B*L, H)
    tok2d = tokeners.reshape(LT, H).astype(dt)                       # (LT, H)
    tok_t = jnp.swapaxes(tok2d, 0, 1)                                # (H, LT) one-time transpose

    Bt = _pick_block_b(B, block_b)
    grid = (B // Bt,)

    inputs = [rp2d, tok_t, tok2d]
    in_specs = [
        pl.BlockSpec((Bt * L, H), lambda b: (b, 0)),     # readers_proj block
        pl.BlockSpec((H, LT), lambda b: (0, 0)),         # shared tokeners^T
        pl.BlockSpec((LT, H), lambda b: (0, 0)),         # shared tokeners
    ]
    if res:
        tail2d = embedding[:, S - L:, :].reshape(B * L, H)
        inputs.append(tail2d)
        in_specs.append(pl.BlockSpec((Bt * L, H), lambda b: (b, 0)))

    if vmem_limit_bytes is None:
        itemsize = jnp.dtype(dt).itemsize
        block_bytes = Bt * L * H * itemsize
        # rp (+ tail) + out, each double-buffered, + tok constants + f32 headroom
        need = 8 * block_bytes + 4 * LT * H * itemsize + (8 << 20)
        vmem_limit_bytes = int(min(max(need, 32 << 20), 64 << 20))   # v7x physical = 64 MiB

    kernel = functools.partial(_rep_memory_attn_kernel, scale=scale, res=res)

    tok_out = pl.pallas_call(
        kernel,
        out_shape=jax.ShapeDtypeStruct((B * L, H), dt),
        grid_spec=pltpu.PrefetchScalarGridSpec(
            num_scalar_prefetch=0,
            grid=grid,
            in_specs=in_specs,
            out_specs=pl.BlockSpec((Bt * L, H), lambda b: (b, 0)),
        ),
        compiler_params=pltpu.CompilerParams(
            dimension_semantics=("parallel",),        # megacore sharding on v7x
            vmem_limit_bytes=vmem_limit_bytes),
    )(*inputs)

    tok_out = tok_out.reshape(B, L, H)

    if res:
        # Tail already includes the residual add; .set() is in place under jit
        # when the caller donates `embedding`.
        return embedding.at[:, S - L:, :].set(tok_out)
    # res=False: append the L new rows; prefix copy is pure XLA data movement.
    return jnp.concatenate([embedding, tok_out], axis=1)


def rep_memory_reference(embedding, tokeners, w1, b1, w2, b2,
                         *, reader_num, length, res):
    B, S, H = embedding.shape
    scale = float(H) ** -0.5
    readers = embedding[:, :reader_num, :].astype(jnp.float32)   # (B,R,H)
    x = jnp.swapaxes(readers, -1, -2)                            # (B,H,R)
    h = jax.nn.gelu(x @ w1 + b1, approximate=False)
    readers_proj = h @ w2 + b2                                   # (B,H,L)
    tok = jnp.broadcast_to(tokeners, (B,) + tokeners.shape[1:]).astype(jnp.float32)
    rel = jnp.swapaxes(tok @ readers_proj, -1, -2) * scale       # (B,L,LT)
    rel = jax.nn.softmax(rel, axis=-1)
    tok_out = (rel @ tok).astype(embedding.dtype)                # (B,L,H)
    if res:
        return embedding.at[:, -length:, :].add(tok_out)
    return jnp.concatenate([embedding, tok_out], axis=1)


if __name__ == "__main__":
    # Module hyperparameters (small, consistent with the forward pass)
    reader_num, length, times, hidden_size = 4, 8, 2, 32
    B, S = 4, 16
    LT = length * times

    key = jax.random.PRNGKey(0)
    k_emb, k_tok, k_w1, k_b1, k_w2, k_b2 = jax.random.split(key, 6)

    embedding = jax.random.normal(k_emb, (B, S, hidden_size), jnp.float32)
    tokeners = jax.random.truncated_normal(
        k_tok, -2.0, 2.0, (1, LT, hidden_size), jnp.float32)
    w1 = 0.1 * jax.random.normal(k_w1, (reader_num, 2 * length), jnp.float32)
    b1 = 0.1 * jax.random.normal(k_b1, (2 * length,), jnp.float32)
    w2 = 0.1 * jax.random.normal(k_w2, (2 * length, length), jnp.float32)
    b2 = 0.1 * jax.random.normal(k_b2, (length,), jnp.float32)

    ok = True

    # f32 path: bb=1 -> Bt=1 (grid=4), bb=128 -> Bt=2 (grid=2; >=2 steps kept)
    for res in (False, True):
        for bb in (1, 128):
            out = rep_memory_forward(embedding, tokeners, w1, b1, w2, b2,
                                     reader_num=reader_num, length=length,
                                     res=res, block_b=bb)
            out = jax.block_until_ready(out)
            ref = rep_memory_reference(embedding, tokeners, w1, b1, w2, b2,
                                       reader_num=reader_num, length=length,
                                       res=res)
            if out.shape != ref.shape or not jnp.allclose(out, ref,
                                                          atol=1e-4, rtol=1e-4):
                ok = False

    # bf16 streamed-operand path (production ViLT dtype); loose tolerance.
    emb_bf = embedding.astype(jnp.bfloat16)
    tok_bf = tokeners.astype(jnp.bfloat16)
    for res in (False, True):
        out = rep_memory_forward(emb_bf, tok_bf, w1, b1, w2, b2,
                                 reader_num=reader_num, length=length,
                                 res=res, block_b=128)
        out = jax.block_until_ready(out)
        ref = rep_memory_reference(emb_bf, tok_bf, w1, b1, w2, b2,
                                   reader_num=reader_num, length=length,
                                   res=res)
        if out.shape != ref.shape or not jnp.allclose(
                out.astype(jnp.float32), ref.astype(jnp.float32),
                atol=1e-1, rtol=1e-1):
            ok = False

    print("KERNEL_OK" if ok else "MISMATCH")
</pallas_src>

<mosaic_0001>
module attributes {stable_mosaic.version = 11 : i64} {
  func.func @_rep_memory_attn_kernel(%arg0: i32, %arg1: memref<8x32xf32, #tpu.memory_space<vmem>>, %arg2: memref<32x16xf32, #tpu.memory_space<vmem>>, %arg3: memref<16x32xf32, #tpu.memory_space<vmem>>, %arg4: memref<8x32xf32, #tpu.memory_space<vmem>>) attributes {dimension_semantics = [#tpu.dimension_semantics<parallel>], iteration_bounds = array<i64: 4>, scalar_prefetch = 0 : i64, scratch_operands = 0 : i64, tpu.core_type = #tpu.core_type<tc>, window_params = [{transform_indices = @transform_0, window_bounds = array<i64: 8, 32>}, {pipeline_mode = #tpu.pipeline_mode<synchronous>, transform_indices = @transform_1, window_bounds = array<i64: 32, 16>}, {pipeline_mode = #tpu.pipeline_mode<synchronous>, transform_indices = @transform_2, window_bounds = array<i64: 16, 32>}, {transform_indices = @transform_3, window_bounds = array<i64: 8, 32>}]} {
    %c0 = arith.constant 0 : index
    %c0_0 = arith.constant 0 : index
    %0 = vector.load %arg1[%c0, %c0_0] : memref<8x32xf32, #tpu.memory_space<vmem>>, vector<8x32xf32>
    %c0_1 = arith.constant 0 : index
    %c0_2 = arith.constant 0 : index
    %1 = vector.load %arg2[%c0_1, %c0_2] : memref<32x16xf32, #tpu.memory_space<vmem>>, vector<32x16xf32>
    %c0_3 = arith.constant 0 : index
    %c0_4 = arith.constant 0 : index
    %2 = vector.load %arg3[%c0_3, %c0_4] : memref<16x32xf32, #tpu.memory_space<vmem>>, vector<16x32xf32>
    %cst = arith.constant dense<0.000000e+00> : vector<8x16xf32>
    %3 = tpu.matmul %0, %1, %cst {dimension_numbers = #tpu.dot_dimension_numbers<[1], [0], [0], [1], [0, 0, 1, 1], [], []>} : vector<8x32xf32>, vector<32x16xf32>, vector<8x16xf32> -> vector<8x16xf32>
    %cst_5 = arith.constant 0.176776692 : f32
    %4 = vector.broadcast %cst_5 : f32 to vector<8x16xf32>
    %5 = arith.mulf %3, %4 : vector<8x16xf32>
    %cst_6 = arith.constant dense<0xFF800000> : vector<8xf32>
    %6 = vector.multi_reduction <maximumf>, %5, %cst_6 [1] : vector<8x16xf32> to vector<8xf32>
    %7 = vector.shape_cast %6 : vector<8xf32> to vector<8x1xf32>
    %8 = vector.broadcast %7 : vector<8x1xf32> to vector<8x16xf32>
    %9 = arith.subf %5, %8 : vector<8x16xf32>
    %10 = math.exp %9 : vector<8x16xf32>
    %cst_7 = arith.constant dense<0.000000e+00> : vector<8xf32>
    %11 = vector.multi_reduction <add>, %10, %cst_7 [1] : vector<8x16xf32> to vector<8xf32>
    %12 = vector.shape_cast %11 : vector<8xf32> to vector<8x1xf32>
    %13 = tpu.reciprocal %12 {approx = true} : vector<8x1xf32> -> vector<8x1xf32>
    %14 = arith.mulf %12, %13 : vector<8x1xf32>
    %cst_8 = arith.constant 2.000000e+00 : f32
    %15 = vector.broadcast %cst_8 : f32 to vector<8x1xf32>
    %16 = arith.subf %15, %14 : vector<8x1xf32>
    %17 = arith.mulf %13, %16 : vector<8x1xf32>
    %18 = vector.broadcast %17 : vector<8x1xf32> to vector<8x16xf32>
    %19 = arith.mulf %10, %18 : vector<8x16xf32>
    %cst_9 = arith.constant dense<0.000000e+00> : vector<8x32xf32>
    %20 = tpu.matmul %19, %2, %cst_9 {dimension_numbers = #tpu.dot_dimension_numbers<[1], [0], [0], [1], [0, 0, 1, 1], [], []>} : vector<8x16xf32>, vector<16x32xf32>, vector<8x32xf32> -> vector<8x32xf32>
    %c0_10 = arith.constant 0 : index
    %c0_11 = arith.constant 0 : index
    %21 = vector.load %arg4[%c0_10, %c0_11] : memref<8x32xf32, #tpu.memory_space<vmem>>, vector<8x32xf32>
    tpu.vector_store %arg4[%c0_10, %c0_11], %20 {strides = array<i32>} : memref<8x32xf32, #tpu.memory_space<vmem>>, vector<8x32xf32>,
    return
  }
  func.func @transform_0(%arg0: i32) -> (i32, i32) {
    %c0_i32 = arith.constant 0 : i32
    %c0_i32_0 = arith.constant 0 : i32
    return %arg0, %c0_i32 : i32, i32
  }
  func.func @transform_1(%arg0: i32) -> (i32, i32) {
    %c0_i32 = arith.constant 0 : i32
    %c0_i32_0 = arith.constant 0 : i32
    %c0_i32_1 = arith.constant 0 : i32
    return %c0_i32, %c0_i32_0 : i32, i32
  }
  func.func @transform_2(%arg0: i32) -> (i32, i32) {
    %c0_i32 = arith.constant 0 : i32
    %c0_i32_0 = arith.constant 0 : i32
    %c0_i32_1 = arith.constant 0 : i32
    return %c0_i32, %c0_i32_0 : i32, i32
  }
  func.func @transform_3(%arg0: i32) -> (i32, i32) {
    %c0_i32 = arith.constant 0 : i32
    %c0_i32_0 = arith.constant 0 : i32
    return %arg0, %c0_i32 : i32, i32
  }
}

</mosaic_0001>

<bundles_post_ra>
// kernel: tpu_custom_call.1
= control target key start
LH: loop header
LB: loop body
LE: loop exit
PB: predicated region body
PF: predicated region fallthrough
CT: control target
= control target key end

     0   :  { %8 = vsyncpa [#allocation3], 0  ;;  %s559_s0 = inlined_call_operand.vmem [shape: f32[32,32], index: 0, kind: input, shape index: {}]   ;;  %s560_s1 = inlined_call_operand.vmem [shape: f32[32,16], index: 1, kind: input, shape index: {}]   ;;  %s561_s2 = inlined_call_operand.vmem [shape: f32[16,32], index: 2, kind: input, shape index: {}]   ;;  %s562_s3 = inlined_call_operand.hbm [shape: f32[32,32], index: 3, kind: output, shape index: {}]  }
   0x1   :  { %10 = vsyncpa [#allocation3 + $0x1], 0  ;;  %s451_s12 = smov 0   ;;  %s453_s13 = smov 0  }
   0x2   :  { %s455_s14 = smov 0   ;;  %s457_s15 = smov 0  }
   0x3 LB: > { %s472_s16 = sadd.s32 4294967295, %s429_s15   ;;  %s312_s17 = sadd.s32 4294967294, %s429_s15   ;;  %s429_s15 = sphi %s457_s15, %s568_s15   ;;  %s425_s14 = sphi %s455_s14, %s567_s14   ;;  %s421_s13 = sphi %s453_s13, %s566_s13   ;;  %s417_s12 = sphi %s451_s12, %s565_s12  }
   0x4   : > { %s476_s18 = sadd.s32 1, %s429_s15   ;;  %s91_s19 = sadd.s32 1, %s425_s14 }
   0x5   : > { %s88_s20 = ssub.s32 %s429_s15, %s476_s18  ;;  %p101_p0 = scmp.ne.s32.totalorder %s425_s14, %s421_s13 }
   0x6   : > { %p89_p1 = scmp.eq.s32.totalorder %s88_s20, 0  ;;  %p102_p2 = scmp.eq.s32.totalorder %s472_s16, 3 }
   0x7   : > { %p107_p3 = scmp.ne.s32.totalorder %s421_s13, %s417_s12  ;;  %p108_p4 = scmp.eq.s32.totalorder %s312_s17, 3 }
   0x8   : > { %s487_s21 = scalar_select %p89_p1, %s425_s14, %s91_s19  }
   0x9   : > { %p489_p5 = por %p102_p2, %p101_p0  ;;  %p493_p6 = por %p108_p4, %p107_p3 }
   0xa   : > { %p315_p7 = scmp.ge.s32.totalorder %s429_s15, 1  ;;  %p139_p8 = scmp.lt.s32.totalorder %s429_s15, 5 }
   0xc   : > { %p140_p9 = pnand %p315_p7, %p139_p8 }
   0xd   : > { %p162_p10 = scmp.lt.s32.totalorder (!%p140_p9), %s472_s16, 3  ;;  %s159_s20 = sand.u32 (!%p140_p9), 1, %s421_s13  }
   0xe   : > { %143 = sbr.rel (%p140_p9) target bundleno = 544 (0x220), region = 32  ;;  %s316_s24 = sshll.u32 (!%p140_p9), %s159_s20, 3 }
   0xf   : > { %s321_s25 = sshll.u32 (!%p140_p9), %s472_s16, 3  ;;  %s161_s29 = scalar_lea.vmem (!%p140_p9), [#allocation2], %s316_s24 }
  0x10   : > { %s248_s28 = scalar_lea.hbm (!%p140_p9), %s562_s3, %s321_s25  ;;  %s238_s5 = scalar_lea.sflag (!%p140_p9), [#allocation3], %s159_s20 }
  0x11   : > { %s252_s4 = sshll.u32 (!%p140_p9), %s248_s28, 4  ;;  %s253_s4 = int_to_ptr.hbm [resolvable:$true] %s252_s4 }
  0x13   : > { %v170_v0 = vld [vmem:[%s560_s1 + $0x18] sm:$0xff]  ;;  %v169_v1 = vld [vmem:[%s560_s1 + $0x10] sm:$0xff]  ;;  %v168_v2 = vld [vmem:[%s560_s1 + $0x8] sm:$0xff]  ;;  %s163_s30 = scalar_select %p162_p10, %s472_s16, 3  ;;  %vm173_vm0 = vcmask 261120   ;;  %vm198_vm1 = vcmask 130048  }
  0x14   : > { %189 = vmatpush.msra.mxu0 %v170_v0  ;;  %v167_v3 = vld [vmem:[%s560_s1] sm:$0xff]  ;;  %v172_v13 = vld [vmem:[%s561_s2 + $0x8] sm:$0xff] }
  0x15   : > { %s317_s6 = sshll.u32 %s163_s30, 3  ;;  %v171_v14 = vld [vmem:[%s561_s2] sm:$0xff]  ;;  %230 = vmatpush.msra.mxu1 %v172_v13  ;;  %s250_s30 = sshll.u32 %s161_s29, 4  ;;  %s251_s30 = int_to_ptr.vmem [resolvable:$true] %s250_s30 }
  0x16   : > { %190 = vmatpush.msra.mxu0 %v169_v1  ;;  %s165_s9 = scalar_lea.vmem %s559_s0, %s317_s6  ;;  %s381_s6 = sshra.s32 %s253_s4, 4  ;;  %s382_s6 = int_to_ptr.hbm [resolvable:$true] %s381_s6 }
  0x17   : > { %v166_v4 = vld [vmem:[%s165_s9] sm:$0xff]  ;;  %231 = vmatpush.msra.mxu1 %v171_v14  ;;  %s383_s7 = scalar_lea.hbm %s382_s6, 8  ;;  %s387_s9 = scalar_lea.hbm %s562_s3, 32 }
  0x18   : > { %191 = vmatpush.msra.mxu0 %v168_v2  ;;  %p384_p11 = scmp.ne.s32.totalorder %s382_s6, %s383_s7  ;;  %p388_p0 = scmp.lt.s32.totalorder %s382_s6, %s562_s3 }
  0x19   : > { %p389_p1 = scmp.lt.s32.totalorder %s387_s9, %s383_s7 }
  0x1a   : > { %192 = vmatpush.msra.mxu0 %v167_v3  ;;  %p385_p12 = pnand %p384_p11, %p489_p5 }
  0x1b   : > { %318 = vmatmul.msk.f32.vlgmr.msra.gmra.mxu0 %vm173_vm0, %v166_v4  ;;  %p390_p2 = por %p389_p1, %p388_p0 }
  0x1c   : > { %p386_p13 = pneg %p385_p12 }
  0x1e   : > { %p391_p3 = pnand %p390_p2, %p386_p13 }
  0x98   : > { %v194_v5 = vpop.f32.mrf.mxu0 }
  0x99   : > { %v197_v6 = vmul.f32 0.17677669, %v194_v5 }
  0x9b   : > { %v199_v7 = vsel %vm198_vm1, %v197_v6, -inf }
  0x9c   : > { %200 = vmax.xlane.f32.xlu0 %v199_v7 }
 0x10f   : > { %v201_v8 = vpop.xlane.xlu0 %200 }
 0x110   : > { %v202_v9 = vsub.f32 %v197_v6, %v201_v8 }
 0x112   : > { %v203_v10 = vmul.f32 1.442695, %v202_v9 }
 0x114   : > { %363 = vpow2.f32 %v203_v10 }
 0x11a   : > { %v364_v11 = vpop.eup %363 }
 0x11b   : > { %v205_v12 = vsel %vm198_vm1, %v364_v11, 0.0 }
 0x11c   : > { %206 = vadd.xlane.f32.xlu0 %v205_v12 }
 0x18f   : > { %v207_v15 = vpop.xlane.xlu0 %206 }
 0x190   : > { %365 = vrcp.f32 %v207_v15 }
 0x196   : > { %v366_v16 = vpop.eup %365 }
 0x197   : > { %v209_v17 = vmul.f32 %v366_v16, %v207_v15 }
 0x199   : > { %v210_v18 = vsub.f32 2.0, %v209_v17 }
 0x19b   : > { %v211_v19 = vmul.f32 %v366_v16, %v210_v18 }
 0x19d   : > { %v212_v20 = vmul.f32 %v364_v11, %v211_v19 }
 0x19f   : > { %319 = vmatmul.msk.f32.vlgmr.msra.gmra.mxu1 %vm198_vm1, %v212_v20 }
 0x21c   : > { %v233_v21 = vpop.f32.mrf.mxu1 }
 0x21d   : > { %236 = vst.msk [vmem:[%s161_s29] sm:$0xff] %vm173_vm0, %v233_v21 }
 0x21e   : > { %394 = shalt.err (!%p391_p3)
}
 0x21f   : > { %324 = dma.vmem_to_hbm [thread:$0]  (%p489_p5), %s251_s30, 128, %s253_s4, %s238_s5  }
 0x220 PF: > { %p330_p4 = scmp.ge.s32.totalorder %s429_s15, 2  ;;  %s264_s17 = sand.u32 1, %s417_s12  }
 0x221   : > { %s265_s19 = scalar_lea.sflag [#allocation3], %s264_s17 }
 0x222   : > { %p327_p7 = pnand %p330_p4, %p493_p6 }
 0x224   : > { %p328_p8 = pneg %p327_p7 }
 0x226   : > { %412 = dma.done.wait (%p328_p8), %s265_s19, 128  }
 0x227   : > { %414 = vsyncadd (%p328_p8), %s265_s19, 4294967168  ;;  %p13_p9 = scmp.ge.s32.totalorder %s476_s18, 6   ;;  %s565_s12 = smov %s421_s13 }
 0x228   : > { %s566_s13 = smov %s425_s14  ;;  %s567_s14 = smov %s487_s21 }
 0x229   : > { %s568_s15 = smov %s476_s18  ;;  %15 = sbr.rel (!%p13_p9) target bundleno = 3 (0x3), region = 67 }
 0x22e   :  { %271 = vsyncpa [#allocation3], 1 }
 0x22f   :  { %273 = vsyncpa [#allocation3 + $0x1], 1 }

</bundles_post_ra>
